<compile_context>
chip_gen: v7x
topology: tpu7x:2x2x1
jax: 0.10.0
libtpu: 0.0.40
codegen_flags: <defaults>
</compile_context>

<pallas_src>
import functools

import jax
import jax.numpy as jnp
import numpy as np
from jax import lax
from jax.experimental import pallas as pl
from jax.experimental.pallas import tpu as pltpu

EPS = 1e-06


def _round_up(a: int, b: int) -> int:
    return (a + b - 1) // b * b


def _cdiv(a: int, b: int) -> int:
    return (a + b - 1) // b


def _gem_kernel(p_ref, x_ref, o_ref, *, hw, tile_hw, ragged, eps, log_hw):
    # p_ref: SMEM (1,) f32 — learned power parameter
    # x_ref: VMEM (tile_rows, tile_hw) f32 — rows = (n, c) pairs, cols = H*W chunk
    # o_ref: VMEM (1, 1, tile_rows) f32 — lane-dense per-row result / accumulator
    k = pl.program_id(1)

    @pl.when(k == 0)
    def _init():
        o_ref[...] = jnp.zeros_like(o_ref)

    p = p_ref[0]
    # Transpose (XLU, hidden slot) so the N*C rows sit on the 128-lane axis and
    # the EUP-bound exp/log below is lane-dense regardless of HW % 128.
    xt = x_ref[...].T                               # (tile_hw, tile_rows)
    xc = jnp.maximum(xt, eps)                       # clamp(min=eps)
    xp = jnp.exp(p * jnp.log(xc))                   # x^p  (x > 0 after clamp)
    if ragged:
        # Last H*W chunk reads past the array; zero out the garbage sublanes.
        hw_idx = k * tile_hw + lax.broadcasted_iota(jnp.int32, (tile_hw, 1), 0)
        xp = jnp.where(hw_idx < hw, xp, 0.0)
    # Sublane reduction over the H*W chunk -> lane-dense partial sums.
    o_ref[...] += jnp.sum(xp, axis=0, keepdims=True)[None, :, :]

    @pl.when(k == pl.num_programs(1) - 1)
    def _finalize():
        inv_p = 1.0 / p
        # (sum / HW) ** (1/p)  ==  exp((log(sum) - log(HW)) * (1/p))
        o_ref[...] = jnp.exp((jnp.log(o_ref[...]) - log_hw) * inv_p)


def gem_pallas(x, p, *, eps=EPS, target_block_bytes=4 << 20):
    """x: (N, C, H, W), p: (1,)  ->  (N, C).  GeM forward (matches PyTorch module)."""
    N, C, H, W = x.shape
    NC, HW = N * C, H * W
    x2 = x.reshape(NC, HW).astype(jnp.float32)

    # ---- tile the H*W (reduction) axis --------------------------------------
    row_align = 128 if NC >= 128 else 8           # lane alignment of the transposed tile
    hw_lanes = _round_up(HW, 128)                 # VMEM lane padding of one row
    if hw_lanes * 4 * row_align > target_block_bytes:
        # Huge H*W: chunk it along an "arbitrary" grid axis and accumulate.
        tile_hw = max(128, (target_block_bytes // (row_align * 4)) // 128 * 128)
        tile_hw = min(tile_hw, hw_lanes)
        tile_hw_vmem = tile_hw
    else:
        tile_hw, tile_hw_vmem = HW, hw_lanes
    num_hw_steps = _cdiv(HW, tile_hw)
    ragged = (num_hw_steps * tile_hw != HW)

    # ---- tile the N*C (parallel) axis ---------------------------------------
    nc_al = _round_up(NC, row_align)
    # Size blocks from the VMEM *lane-padded* footprint so 2x pipeline buffers
    # (+ transposed intermediates) fit every chip's 32 MiB scoped budget.
    rows_budget = max(row_align,
                      (target_block_bytes // (tile_hw_vmem * 4)) // row_align * row_align)
    rows_cap = nc_al
    if nc_al >= 8 * 128:                          # >= 8 grid steps: both v7x TCs pipelined
        rows_cap = _round_up(_cdiv(nc_al, 8), row_align)
    tile_rows_max = max(row_align, min(rows_budget, rows_cap, nc_al))
    num_row_tiles = _cdiv(nc_al, tile_rows_max)
    tile_rows = _round_up(_cdiv(nc_al, num_row_tiles), row_align)   # minimal padding
    nc_pad = num_row_tiles * tile_rows

    if nc_pad != NC:
        # Padding rows are harmless (>0, finite) and are sliced off afterwards.
        x2 = jnp.pad(x2, ((0, nc_pad - NC), (0, 0)), constant_values=1.0)

    kernel = functools.partial(
        _gem_kernel, hw=HW, tile_hw=tile_hw, ragged=ragged, eps=eps,
        log_hw=float(np.log(HW)))

    out = pl.pallas_call(
        kernel,
        out_shape=jax.ShapeDtypeStruct((num_row_tiles, 1, tile_rows), jnp.float32),
        grid=(num_row_tiles, num_hw_steps),
        in_specs=[
            pl.BlockSpec(memory_space=pltpu.MemorySpace.SMEM),           # p (scalar)
            pl.BlockSpec((tile_rows, tile_hw), lambda i, k: (i, k)),     # x tile
        ],
        out_specs=pl.BlockSpec((1, 1, tile_rows), lambda i, k: (i, 0, 0)),
        compiler_params=pltpu.CompilerParams(
            dimension_semantics=("parallel", "arbitrary"),
            vmem_limit_bytes=32 * 1024 * 1024,
        ),
        cost_estimate=pl.CostEstimate(
            flops=3 * NC * HW + 4 * NC,
            transcendentals=2 * NC * HW + 2 * NC,
            bytes_accessed=4 * NC * HW + 4 * NC + 4,
        ),
    )(p.reshape(1).astype(jnp.float32), x2)

    return out.reshape(nc_pad)[:NC].reshape(N, C).astype(x.dtype)


def gem_reference(x, p):
    xc = jnp.maximum(x, EPS)                      # clamp(min=eps)
    xp = jnp.power(xc, p[0])
    m = jnp.mean(xp, axis=(-2, -1))
    return jnp.power(m, 1.0 / p[0])


if __name__ == "__main__":
    key = jax.random.PRNGKey(0)
    N, C, H, W = 2, 4, 16, 16
    x = jax.random.uniform(key, (N, C, H, W), dtype=jnp.float32)

    # Parameter init matches nn.Parameter(torch.ones(1) * 3)
    p = jnp.ones((1,), dtype=jnp.float32) * 3.0

    out = gem_pallas(x, p)
    out = jax.block_until_ready(out)

    ref = gem_reference(x, p)
    assert out.shape == (N, C)
    np.testing.assert_allclose(np.asarray(out), np.asarray(ref), rtol=1e-5, atol=1e-5)

    print("KERNEL_OK")
</pallas_src>

<mosaic_0001>
module attributes {stable_mosaic.version = 11 : i64} {
  func.func @_gem_kernel(%arg0: i32, %arg1: i32, %arg2: memref<1xf32, #tpu.memory_space<smem>>, %arg3: memref<8x256xf32, #tpu.memory_space<vmem>>, %arg4: memref<1x1x8xf32, #tpu.memory_space<vmem>>) attributes {dimension_semantics = [#tpu.dimension_semantics<parallel>, #tpu.dimension_semantics<arbitrary>], iteration_bounds = array<i64: 1, 1>, scalar_prefetch = 0 : i64, scratch_operands = 0 : i64, tpu.core_type = #tpu.core_type<tc>, window_params = [{transform_indices = @transform_0, window_bounds = array<i64: 1>}, {transform_indices = @transform_1, window_bounds = array<i64: 8, 256>}, {transform_indices = @transform_2, window_bounds = array<i64: 1, 1, 8>}]} {
    %c0_i32 = arith.constant 0 : i32
    %0 = arith.cmpi eq, %arg1, %c0_i32 : i32
    %1 = arith.extui %0 : i1 to i32
    %c0_i32_0 = arith.constant 0 : i32
    %2 = arith.cmpi ne, %1, %c0_i32_0 : i32
    scf.if %2 {
      %cst_12 = arith.constant 0.000000e+00 : f32
      %21 = vector.broadcast %cst_12 : f32 to vector<1x1x8xf32>
      %c0_13 = arith.constant 0 : index
      %c0_14 = arith.constant 0 : index
      %c0_15 = arith.constant 0 : index
      %22 = vector.load %arg4[%c0_13, %c0_14, %c0_15] : memref<1x1x8xf32, #tpu.memory_space<vmem>>, vector<1x1x8xf32>
      tpu.vector_store %arg4[%c0_13, %c0_14, %c0_15], %21 {strides = array<i32>} : memref<1x1x8xf32, #tpu.memory_space<vmem>>, vector<1x1x8xf32>,
    } else {
    }
    %c0 = arith.constant 0 : index
    %3 = memref.load %arg2[%c0] : memref<1xf32, #tpu.memory_space<smem>>
    %c0_1 = arith.constant 0 : index
    %c0_2 = arith.constant 0 : index
    %4 = vector.load %arg3[%c0_1, %c0_2] : memref<8x256xf32, #tpu.memory_space<vmem>>, vector<8x256xf32>
    %5 = tpu.transpose %4, [1, 0] : vector<8x256xf32> -> vector<256x8xf32>
    %cst = arith.constant 9.99999997E-7 : f32
    %6 = vector.broadcast %cst : f32 to vector<256x8xf32>
    %7 = arith.maximumf %5, %6 : vector<256x8xf32>
    %8 = math.log %7 : vector<256x8xf32>
    %9 = vector.broadcast %3 : f32 to vector<256x8xf32>
    %10 = arith.mulf %9, %8 : vector<256x8xf32>
    %11 = math.exp %10 : vector<256x8xf32>
    %c0_3 = arith.constant 0 : index
    %c0_4 = arith.constant 0 : index
    %c0_5 = arith.constant 0 : index
    %12 = vector.load %arg4[%c0_3, %c0_4, %c0_5] : memref<1x1x8xf32, #tpu.memory_space<vmem>>, vector<1x1x8xf32>
    %cst_6 = arith.constant dense<0.000000e+00> : vector<8xf32>
    %13 = vector.multi_reduction <add>, %11, %cst_6 [0] : vector<256x8xf32> to vector<8xf32>
    %14 = vector.shape_cast %13 : vector<8xf32> to vector<1x8xf32>
    %15 = vector.shape_cast %14 : vector<1x8xf32> to vector<1x1x8xf32>
    %16 = arith.addf %12, %15 : vector<1x1x8xf32>
    %c0_7 = arith.constant 0 : index
    %c0_8 = arith.constant 0 : index
    %c0_9 = arith.constant 0 : index
    %17 = vector.load %arg4[%c0_7, %c0_8, %c0_9] : memref<1x1x8xf32, #tpu.memory_space<vmem>>, vector<1x1x8xf32>
    tpu.vector_store %arg4[%c0_7, %c0_8, %c0_9], %16 {strides = array<i32>} : memref<1x1x8xf32, #tpu.memory_space<vmem>>, vector<1x1x8xf32>,
    %c0_i32_10 = arith.constant 0 : i32
    %18 = arith.cmpi eq, %arg1, %c0_i32_10 : i32
    %19 = arith.extui %18 : i1 to i32
    %c0_i32_11 = arith.constant 0 : i32
    %20 = arith.cmpi ne, %19, %c0_i32_11 : i32
    scf.if %20 {
      %cst_12 = arith.constant 1.000000e+00 : f32
      %21 = arith.divf %cst_12, %3 : f32
      %c0_13 = arith.constant 0 : index
      %c0_14 = arith.constant 0 : index
      %c0_15 = arith.constant 0 : index
      %22 = vector.load %arg4[%c0_13, %c0_14, %c0_15] : memref<1x1x8xf32, #tpu.memory_space<vmem>>, vector<1x1x8xf32>
      %23 = math.log %22 : vector<1x1x8xf32>
      %cst_16 = arith.constant 5.54517746 : f32
      %24 = vector.broadcast %cst_16 : f32 to vector<1x1x8xf32>
      %25 = arith.subf %23, %24 : vector<1x1x8xf32>
      %26 = vector.broadcast %21 : f32 to vector<1x1x8xf32>
      %27 = arith.mulf %25, %26 : vector<1x1x8xf32>
      %28 = math.exp %27 : vector<1x1x8xf32>
      %c0_17 = arith.constant 0 : index
      %c0_18 = arith.constant 0 : index
      %c0_19 = arith.constant 0 : index
      %29 = vector.load %arg4[%c0_17, %c0_18, %c0_19] : memref<1x1x8xf32, #tpu.memory_space<vmem>>, vector<1x1x8xf32>
      tpu.vector_store %arg4[%c0_17, %c0_18, %c0_19], %28 {strides = array<i32>} : memref<1x1x8xf32, #tpu.memory_space<vmem>>, vector<1x1x8xf32>,
    } else {
    }
    return
  }
  func.func @transform_0(%arg0: i32, %arg1: i32) -> i32 {
    %c0_i32 = arith.constant 0 : i32
    %c0_i32_0 = arith.constant 0 : i32
    return %c0_i32 : i32
  }
  func.func @transform_1(%arg0: i32, %arg1: i32) -> (i32, i32) {
    %c0_i32 = arith.constant 0 : i32
    return %arg0, %arg1 : i32, i32
  }
  func.func @transform_2(%arg0: i32, %arg1: i32) -> (i32, i32, i32) {
    %c0_i32 = arith.constant 0 : i32
    %c0_i32_0 = arith.constant 0 : i32
    %c0_i32_1 = arith.constant 0 : i32
    return %arg0, %c0_i32, %c0_i32_0 : i32, i32, i32
  }
}

</mosaic_0001>

<bundles_post_ra>
// kernel: tpu_custom_call.1
= control target key start
LH: loop header
LB: loop body
LE: loop exit
PB: predicated region body
PF: predicated region fallthrough
CT: control target
= control target key end

     0   :  { %8 = vsyncpa [#allocation4], 0  ;;  %s710_s0 = inlined_call_operand.<no memory space> [shape: f32[1], index: 0, kind: input, shape index: {}]   ;;  %s711_s1 = inlined_call_operand.hbm [shape: f32[8,256], index: 1, kind: input, shape index: {}]   ;;  %s712_s2 = inlined_call_operand.hbm [shape: f32[1,1,8], index: 2, kind: output, shape index: {}]  }
   0x1   :  { %9 = vsyncpa [#allocation5], 0  ;;  %s583_s9 = smov [#allocation3]   ;;  %s535_s13 = scalar_lea.hbm %s711_s1, 256 }
   0x2   :  { %s18_s10 = sshll.u32 %s583_s9, 4  ;;  %p536_p0 = scmp.ne.s32.totalorder %s711_s1, %s535_s13  ;;  %s19_s10 = int_to_ptr.vmem [resolvable:$true] %s18_s10 }
   0x3   :  { %p539_p1 = scmp.lt.u32.totalorder %s535_s13, %s711_s1 }
   0x5   :  { %p541_p2 = pnand %p539_p1, %p536_p0 }
   0x7   :  { %544 = shalt.err (!%p541_p2)
}
   0x8   :  { %s545_s18 = scalar_lea.vmem %s19_s10, 256  ;;  %p550_p4 = scmp.lt.s32.totalorder %s19_s10, %s19_s10 }
   0x9   :  { %p546_p3 = scmp.ne.s32.totalorder %s19_s10, %s545_s18  ;;  %p551_p5 = scmp.lt.s32.totalorder %s545_s18, %s545_s18 }
   0xb   :  { %p552_p6 = por %p551_p5, %p550_p4 }
   0xd   :  { %p553_p7 = pnand %p552_p6, %p546_p3 }
   0xf   :  { %556 = shalt.err (!%p553_p7)
}
  0x10   :  { %21 = dma.hbm_to_vmem [thread:$0]  %s711_s1, 256, %s19_s10, [#allocation4]  }
  0x11   :  { %579 = dma.done.wait [#allocation4], 256  }
  0x12   :  { %580 = vsyncadd [#allocation4], 4294967040  ;;  %v32_v0 = vld [vmem:[#allocation3] sm:$0xff]  ;;  %v33_v1 = vld [vmem:[#allocation3 + $0x8] sm:$0xff]  ;;  %v616_v3 = vstv %s710_s0  ;;  %vm29_vm0 = vcmask 57344   ;;  %v584_v11 = vmov 0.0  }
  0x13   :  { %34 = vxpose.xlu0.b32.start.end [1/1] (short) %v32_v0, 128  ;;  %401 = vrcp.f32 %v616_v3  ;;  %30 = vst.msk [vmem:[#allocation6] sm:$0x1] %vm29_vm0, %v584_v11  ;;  %vm292_vm1 = vcmask 64512   ;;  %s585_s1 = smov [#allocation6]  }
  0x14   :  { %s386_s23 = sshll.u32 %s585_s1, 4  ;;  %s387_s23 = int_to_ptr.vmem [resolvable:$true] %s386_s23 }
  0x15   :  { %s557_s24 = scalar_lea.vmem %s387_s23, 16  ;;  %s561_s25 = scalar_lea.vmem %s387_s23, 32 }
  0x16   :  { %p558_p8 = scmp.ne.s32.totalorder %s387_s23, %s557_s24  ;;  %p562_p9 = scmp.lt.s32.totalorder %s387_s23, %s387_s23 }
  0x17   :  { %p563_p10 = scmp.lt.s32.totalorder %s561_s25, %s557_s24 }
  0x19   :  { %p564_p11 = por %p563_p10, %p562_p9 }
  0x1b   :  { %p565_p12 = pnand %p564_p11, %p558_p8 }
  0x1d   :  { %v402_v7 = vpop.eup %401 }
  0x1e   :  { %396 = vpush %v402_v7 }
  0x4f   :  { %s397_s0 = spop %396 }
  0x50   :  { %66 = vxpose.xlu0.b32.start.end [1/1] (short) %v33_v1, 128 }
  0x93   :  { %v50_v2 = vpop.trf.xlu0 }
  0x94   :  { %v98_v19 = vmax.f32 %v50_v2, 1e-06 }
  0x97   :  { %v51_v4 = vpop.trf.xlu0 }
  0x98   :  { %v99_v18 = vmax.f32 %v51_v4, 1e-06 }
  0x9a   :  { %403 = vlog2.f32 %v99_v18 }
  0x9b   :  { %v52_v5 = vpop.trf.xlu0  ;;  %405 = vlog2.f32 %v98_v19 }
  0x9c   :  { %v100_v20 = vmax.f32 %v52_v5, 1e-06 }
  0x9e   :  { %407 = vlog2.f32 %v100_v20 }
  0x9f   :  { %v53_v6 = vpop.trf.xlu0 }
  0xa0   :  { %v101_v22 = vmax.f32 %v53_v6, 1e-06 }
  0xa2   :  { %409 = vlog2.f32 %v101_v22 }
  0xa3   :  { %v54_v8 = vpop.trf.xlu0 }
  0xa4   :  { %v102_v23 = vmax.f32 %v54_v8, 1e-06  ;;  %v404_v29 = vpop.eup %403 }
  0xa5   :  { %v406_v32 = vpop.eup %405  ;;  %v133_v35 = vmul.f32 0.6931472, %v404_v29 }
  0xa6   :  { %411 = vlog2.f32 %v102_v23  ;;  %v131_v38 = vmul.f32 0.6931472, %v406_v32 }
  0xa7   :  { %v55_v9 = vpop.trf.xlu0  ;;  %v196_v43 = vmul.f32 %v616_v3, %v133_v35 }
  0xa8   :  { %v103_v25 = vmax.f32 %v55_v9, 1e-06  ;;  %v408_v34 = vpop.eup %407  ;;  %v195_v47 = vmul.f32 %v616_v3, %v131_v38 }
  0xa9   :  { %v135_v41 = vmul.f32 0.6931472, %v408_v34  ;;  %v229_v53 = vmul.f32 1.442695, %v196_v43 }
  0xaa   :  { %413 = vlog2.f32 %v103_v25  ;;  %v227_v58 = vmul.f32 1.442695, %v195_v47 }
  0xab   :  { %v56_v10 = vpop.trf.xlu0  ;;  %v197_v51 = vmul.f32 %v616_v3, %v135_v41 }
  0xac   :  { %v104_v26 = vmax.f32 %v56_v10, 1e-06  ;;  %v410_v36 = vpop.eup %409 }
  0xad   :  { %v137_v44 = vmul.f32 0.6931472, %v410_v36  ;;  %v231_v63 = vmul.f32 1.442695, %v197_v51 }
  0xae   :  { %415 = vlog2.f32 %v104_v26 }
  0xaf   :  { %v57_v12 = vpop.trf.xlu0  ;;  %v198_v54 = vmul.f32 %v616_v3, %v137_v44 }
  0xb0   :  { %v105_v28 = vmax.f32 %v57_v12, 1e-06  ;;  %v412_v40 = vpop.eup %411 }
  0xb1   :  { %v139_v48 = vmul.f32 0.6931472, %v412_v40  ;;  %v233_v0 = vmul.f32 1.442695, %v198_v54 }
  0xb2   :  { %417 = vlog2.f32 %v105_v28 }
  0xb3   :  { %v58_v13 = vpop.trf.xlu0  ;;  %v199_v59 = vmul.f32 %v616_v3, %v139_v48 }
  0xb4   :  { %v106_v30 = vmax.f32 %v58_v13, 1e-06  ;;  %v414_v45 = vpop.eup %413 }
  0xb5   :  { %v141_v55 = vmul.f32 0.6931472, %v414_v45  ;;  %v235_v6 = vmul.f32 1.442695, %v199_v59 }
  0xb6   :  { %419 = vlog2.f32 %v106_v30 }
  0xb7   :  { %v59_v14 = vpop.trf.xlu0  ;;  %v200_v1 = vmul.f32 %v616_v3, %v141_v55 }
  0xb8   :  { %v107_v33 = vmax.f32 %v59_v14, 1e-06  ;;  %v416_v50 = vpop.eup %415 }
  0xb9   :  { %v143_v60 = vmul.f32 0.6931472, %v416_v50  ;;  %v237_v12 = vmul.f32 1.442695, %v200_v1 }
  0xba   :  { %421 = vlog2.f32 %v107_v33 }
  0xbb   :  { %v60_v15 = vpop.trf.xlu0  ;;  %v201_v7 = vmul.f32 %v616_v3, %v143_v60 }
  0xbc   :  { %v108_v37 = vmax.f32 %v60_v15, 1e-06  ;;  %v418_v56 = vpop.eup %417 }
  0xbd   :  { %v145_v2 = vmul.f32 0.6931472, %v418_v56 }
  0xbe   :  { %423 = vlog2.f32 %v108_v37 }
  0xbf   :  { %v61_v16 = vpop.trf.xlu0  ;;  %v202_v13 = vmul.f32 %v616_v3, %v145_v2 }
  0xc0   :  { %v109_v42 = vmax.f32 %v61_v16, 1e-06  ;;  %v420_v62 = vpop.eup %419 }
  0xc1   :  { %v147_v8 = vmul.f32 0.6931472, %v420_v62  ;;  %v241_v23 = vmul.f32 1.442695, %v202_v13 }
  0xc2   :  { %425 = vlog2.f32 %v109_v42 }
  0xc3   :  { %v62_v17 = vpop.trf.xlu0  ;;  %v203_v18 = vmul.f32 %v616_v3, %v147_v8 }
  0xc4   :  { %v110_v46 = vmax.f32 %v62_v17, 1e-06  ;;  %v422_v4 = vpop.eup %421  ;;  %v239_v17 = vmul.f32 1.442695, %v201_v7 }
  0xc5   :  { %v149_v14 = vmul.f32 0.6931472, %v422_v4  ;;  %v243_v29 = vmul.f32 1.442695, %v203_v18 }
  0xc6   :  { %427 = vlog2.f32 %v110_v46 }
  0xc7   :  { %v63_v21 = vpop.trf.xlu0 }
  0xc8   :  { %v111_v52 = vmax.f32 %v63_v21, 1e-06  ;;  %v424_v10 = vpop.eup %423 }
  0xc9   :  { %v151_v19 = vmul.f32 0.6931472, %v424_v10 }
  0xca   :  { %429 = vlog2.f32 %v111_v52 }
  0xcb   :  { %v64_v24 = vpop.trf.xlu0  ;;  %431 = vpow2.f32 %v229_v53  ;;  %v205_v30 = vmul.f32 %v616_v3, %v151_v19 }
  0xcc   :  { %v112_v57 = vmax.f32 %v64_v24, 1e-06  ;;  %v426_v15 = vpop.eup %425  ;;  %v204_v24 = vmul.f32 %v616_v3, %v149_v14 }
  0xcd   :  { %v153_v25 = vmul.f32 0.6931472, %v426_v15  ;;  %v247_v43 = vmul.f32 1.442695, %v205_v30 }
  0xce   :  { %433 = vlog2.f32 %v112_v57  ;;  %v245_v36 = vmul.f32 1.442695, %v204_v24 }
  0xcf   :  { %v620_v27 = vpop.trf.xlu0  ;;  %435 = vpow2.f32 %v227_v58  ;;  %v206_v37 = vmul.f32 %v616_v3, %v153_v25 }
  0xd0   :  { %v113_v5 = vmax.f32 %v620_v27, 1e-06  ;;  %437 = vpow2.f32 %v231_v63  ;;  %v428_v21 = vpop.eup %427 }
  0xd1   :  { %439 = vpow2.f32 %v233_v0  ;;  %v249_v52 = vmul.f32 1.442695, %v206_v37 }
  0xd2   :  { %441 = vlog2.f32 %v113_v5 }
  0xd3   :  { %v622_v31 = vpop.trf.xlu0  ;;  %443 = vpow2.f32 %v235_v6 }
  0xd4   :  { %v114_v11 = vmax.f32 %v622_v31, 1e-06  ;;  %v430_v26 = vpop.eup %429  ;;  %v155_v31 = vmul.f32 0.6931472, %v428_v21 }
  0xd5   :  { %v432_v28 = vpop.eup %431  ;;  %v157_v38 = vmul.f32 0.6931472, %v430_v26 }
  0xd6   :  { %445 = vlog2.f32 %v114_v11  ;;  %v294_v40 = vsel %vm292_vm1, %v432_v28, 0.0  ;;  %v207_v44 = vmul.f32 %v616_v3, %v155_v31 }
  0xd7   :  { %v624_v39 = vpop.trf.xlu0  ;;  %447 = vpow2.f32 %v237_v12  ;;  %v208_v53 = vmul.f32 %v616_v3, %v157_v38 }
  0xd8   :  { %v115_v16 = vmax.f32 %v624_v39, 1e-06  ;;  %v434_v33 = vpop.eup %433  ;;  %v251_v59 = vmul.f32 1.442695, %v207_v44 }
  0xd9   :  { %v436_v35 = vpop.eup %435  ;;  %v159_v45 = vmul.f32 0.6931472, %v434_v33  ;;  %v253_v5 = vmul.f32 1.442695, %v208_v53 }
  0xda   :  { %449 = vlog2.f32 %v115_v16  ;;  %v438_v39 = vpop.eup %437  ;;  %v293_v48 = vsel %vm292_vm1, %v436_v35, 0.0 }
  0xdb   :  { %v628_v49 = vpop.trf.xlu0  ;;  %451 = vpow2.f32 %v239_v17  ;;  %v440_v42 = vpop.eup %439  ;;  %v296_v51 = vsel %vm292_vm1, %v438_v39, 0.0  ;;  %v295_v55 = vadd.f32 %v294_v40, %v293_v48  ;;  %v209_v60 = vmul.f32 %v616_v3, %v159_v45 }
  0xdc   :  { %v116_v22 = vmax.f32 %v628_v49, 1e-06  ;;  %v442_v47 = vpop.eup %441  ;;  %v298_v56 = vsel %vm292_vm1, %v440_v42, 0.0 }
  0xdd   :  { %v444_v50 = vpop.eup %443  ;;  %v297_v0 = vadd.f32 %v296_v51, %v295_v55  ;;  %v255_v11 = vmul.f32 1.442695, %v209_v60 }
  0xde   :  { %453 = vlog2.f32 %v116_v22  ;;  %v300_v4 = vsel %vm292_vm1, %v444_v50, 0.0 }
  0xdf   :  { %v85_v61 = vpop.trf.xlu0  ;;  %455 = vpow2.f32 %v241_v23  ;;  %v299_v8 = vadd.f32 %v298_v56, %v297_v0 }
  0xe0   :  { %v117_v27 = vmax.f32 %v85_v61, 1e-06  ;;  %v446_v54 = vpop.eup %445  ;;  %v161_v61 = vmul.f32 0.6931472, %v442_v47 }
  0xe1   :  { %v448_v58 = vpop.eup %447  ;;  %v163_v6 = vmul.f32 0.6931472, %v446_v54  ;;  %v301_v16 = vadd.f32 %v300_v4, %v299_v8 }
  0xe2   :  { %457 = vlog2.f32 %v117_v27  ;;  %v210_v12 = vmul.f32 %v616_v3, %v161_v61 }
  0xe3   :  { %v86_v9 = vpop.trf.xlu0  ;;  %459 = vpow2.f32 %v243_v29 }
  0xe4   :  { %v118_v34 = vmax.f32 %v86_v9, 1e-06  ;;  %v450_v63 = vpop.eup %449  ;;  %v302_v9 = vsel %vm292_vm1, %v448_v58, 0.0  ;;  %v257_v26 = vmul.f32 1.442695, %v210_v12 }
  0xe5   :  { %v452_v2 = vpop.eup %451  ;;  %v165_v13 = vmul.f32 0.6931472, %v450_v63  ;;  %v303_v23 = vadd.f32 %v302_v9, %v301_v16 }
  0xe6   :  { %461 = vlog2.f32 %v118_v34  ;;  %v304_v19 = vsel %vm292_vm1, %v452_v2, 0.0 }
  0xe7   :  { %v87_v20 = vpop.trf.xlu0  ;;  %463 = vpow2.f32 %v245_v36  ;;  %v212_v27 = vmul.f32 %v616_v3, %v165_v13  ;;  %v305_v31 = vadd.f32 %v304_v19, %v303_v23 }
  0xe8   :  { %v119_v41 = vmax.f32 %v87_v20, 1e-06  ;;  %v454_v7 = vpop.eup %453  ;;  %v211_v20 = vmul.f32 %v616_v3, %v163_v6 }
  0xe9   :  { %v456_v10 = vpop.eup %455  ;;  %v167_v21 = vmul.f32 0.6931472, %v454_v7  ;;  %v261_v42 = vmul.f32 1.442695, %v212_v27 }
  0xea   :  { %465 = vlog2.f32 %v119_v41  ;;  %v306_v24 = vsel %vm292_vm1, %v456_v10, 0.0  ;;  %v259_v35 = vmul.f32 1.442695, %v211_v20 }
  0xeb   :  { %v88_v32 = vpop.trf.xlu0  ;;  %467 = vpow2.f32 %v247_v43  ;;  %v213_v36 = vmul.f32 %v616_v3, %v167_v21  ;;  %v307_v39 = vadd.f32 %v306_v24, %v305_v31 }
  0xec   :  { %v120_v49 = vmax.f32 %v88_v32, 1e-06  ;;  %v458_v15 = vpop.eup %457 }
  0xed   :  { %v460_v18 = vpop.eup %459  ;;  %v169_v28 = vmul.f32 0.6931472, %v458_v15  ;;  %v263_v51 = vmul.f32 1.442695, %v213_v36 }
  0xee   :  { %469 = vlog2.f32 %v120_v49  ;;  %v308_v34 = vsel %vm292_vm1, %v460_v18, 0.0 }
  0xef   :  { %v89_v46 = vpop.trf.xlu0  ;;  %471 = vpow2.f32 %v249_v52  ;;  %v214_v43 = vmul.f32 %v616_v3, %v169_v28  ;;  %v309_v47 = vadd.f32 %v308_v34, %v307_v39 }
  0xf0   :  { %v121_v57 = vmax.f32 %v89_v46, 1e-06  ;;  %v462_v22 = vpop.eup %461 }
  0xf1   :  { %v464_v25 = vpop.eup %463  ;;  %v171_v37 = vmul.f32 0.6931472, %v462_v22  ;;  %v265_v58 = vmul.f32 1.442695, %v214_v43 }
  0xf2   :  { %473 = vlog2.f32 %v121_v57  ;;  %v310_v40 = vsel %vm292_vm1, %v464_v25, 0.0 }
  0xf3   :  { %v90_v62 = vpop.trf.xlu0  ;;  %475 = vpow2.f32 %v251_v59  ;;  %v215_v52 = vmul.f32 %v616_v3, %v171_v37  ;;  %v311_v55 = vadd.f32 %v310_v40, %v309_v47 }
  0xf4   :  { %v122_v1 = vmax.f32 %v90_v62, 1e-06  ;;  %v466_v30 = vpop.eup %465 }
  0xf5   :  { %v468_v33 = vpop.eup %467  ;;  %v173_v44 = vmul.f32 0.6931472, %v466_v30  ;;  %v267_v4 = vmul.f32 1.442695, %v215_v52 }
  0xf6   :  { %477 = vlog2.f32 %v122_v1  ;;  %v312_v48 = vsel %vm292_vm1, %v468_v33, 0.0 }
  0xf7   :  { %v91_v14 = vpop.trf.xlu0  ;;  %479 = vpow2.f32 %v253_v5  ;;  %v216_v59 = vmul.f32 %v616_v3, %v173_v44  ;;  %v313_v63 = vadd.f32 %v312_v48, %v311_v55 }
  0xf8   :  { %v123_v17 = vmax.f32 %v91_v14, 1e-06  ;;  %v470_v38 = vpop.eup %469 }
  0xf9   :  { %v472_v41 = vpop.eup %471  ;;  %v175_v53 = vmul.f32 0.6931472, %v470_v38  ;;  %v269_v9 = vmul.f32 1.442695, %v216_v59 }
  0xfa   :  { %481 = vlog2.f32 %v123_v17  ;;  %v314_v56 = vsel %vm292_vm1, %v472_v41, 0.0 }
  0xfb   :  { %483 = vpow2.f32 %v255_v11  ;;  %v92_v29 = vpop.trf.xlu0  ;;  %v217_v5 = vmul.f32 %v616_v3, %v175_v53  ;;  %v315_v7 = vadd.f32 %v314_v56, %v313_v63 }
  0xfc   :  { %v124_v32 = vmax.f32 %v92_v29, 1e-06  ;;  %v474_v46 = vpop.eup %473 }
  0xfd   :  { %v476_v50 = vpop.eup %475  ;;  %v177_v60 = vmul.f32 0.6931472, %v474_v46  ;;  %v271_v18 = vmul.f32 1.442695, %v217_v5 }
  0xfe   :  { %485 = vlog2.f32 %v124_v32  ;;  %v316_v0 = vsel %vm292_vm1, %v476_v50, 0.0 }
  0xff   :  { %487 = vpow2.f32 %v257_v26  ;;  %v93_v45 = vpop.trf.xlu0  ;;  %v218_v10 = vmul.f32 %v616_v3, %v177_v60  ;;  %v317_v14 = vadd.f32 %v316_v0, %v315_v7 }
 0x100   :  { %v125_v49 = vmax.f32 %v93_v45, 1e-06  ;;  %489 = vpow2.f32 %v259_v35  ;;  %v478_v54 = vpop.eup %477 }
 0x101   :  { %v480_v57 = vpop.eup %479  ;;  %v179_v6 = vmul.f32 0.6931472, %v478_v54  ;;  %v273_v23 = vmul.f32 1.442695, %v218_v10 }
 0x102   :  { %491 = vlog2.f32 %v125_v49  ;;  %v318_v8 = vsel %vm292_vm1, %v480_v57, 0.0 }
 0x103   :  { %493 = vpow2.f32 %v261_v42  ;;  %v94_v61 = vpop.trf.xlu0  ;;  %v219_v19 = vmul.f32 %v616_v3, %v179_v6  ;;  %v319_v21 = vadd.f32 %v318_v8, %v317_v14 }
 0x104   :  { %v482_v62 = vpop.eup %481  ;;  %v126_v1 = vmax.f32 %v94_v61, 1e-06  ;;  %495 = vpow2.f32 %v263_v51 }
 0x105   :  { %v484_v2 = vpop.eup %483  ;;  %v181_v11 = vmul.f32 0.6931472, %v482_v62  ;;  %v275_v31 = vmul.f32 1.442695, %v219_v19 }
 0x106   :  { %497 = vlog2.f32 %v126_v1  ;;  %v320_v15 = vsel %vm292_vm1, %v484_v2, 0.0 }
 0x107   :  { %499 = vpow2.f32 %v265_v58  ;;  %v95_v12 = vpop.trf.xlu0  ;;  %v220_v24 = vmul.f32 %v616_v3, %v181_v11  ;;  %v321_v27 = vadd.f32 %v320_v15, %v319_v21 }
 0x108   :  { %v486_v13 = vpop.eup %485  ;;  %v127_v16 = vmax.f32 %v95_v12, 1e-06  ;;  %501 = vpow2.f32 %v267_v4 }
 0x109   :  { %v488_v17 = vpop.eup %487  ;;  %v183_v20 = vmul.f32 0.6931472, %v486_v13  ;;  %v277_v37 = vmul.f32 1.442695, %v220_v24 }
 0x10a   :  { %503 = vlog2.f32 %v127_v16  ;;  %v490_v22 = vpop.eup %489  ;;  %v322_v28 = vsel %vm292_vm1, %v488_v17, 0.0 }
 0x10b   :  { %505 = vpow2.f32 %v269_v9  ;;  %v96_v25 = vpop.trf.xlu0  ;;  %v221_v32 = vmul.f32 %v616_v3, %v183_v20  ;;  %v324_v34 = vsel %vm292_vm1, %v490_v22, 0.0  ;;  %v323_v36 = vadd.f32 %v322_v28, %v321_v27 }
 0x10c   :  { %v492_v26 = vpop.eup %491  ;;  %v128_v29 = vmax.f32 %v96_v25, 1e-06  ;;  %507 = vpow2.f32 %v271_v18 }
 0x10d   :  { %v494_v30 = vpop.eup %493  ;;  %v185_v33 = vmul.f32 0.6931472, %v492_v26  ;;  %v325_v44 = vadd.f32 %v324_v34, %v323_v36  ;;  %v279_v45 = vmul.f32 1.442695, %v221_v32 }
 0x10e   :  { %509 = vlog2.f32 %v128_v29  ;;  %v496_v35 = vpop.eup %495  ;;  %v326_v41 = vsel %vm292_vm1, %v494_v30, 0.0 }
 0x10f   :  { %511 = vpow2.f32 %v273_v23  ;;  %v222_v38 = vmul.f32 %v616_v3, %v185_v33  ;;  %v97_v39 = vpop.trf.xlu0  ;;  %v328_v47 = vsel %vm292_vm1, %v496_v35, 0.0  ;;  %v327_v49 = vadd.f32 %v326_v41, %v325_v44  ;;  %v291_v44 = vld [vmem:[#allocation6] sm:$0x1] }
 0x110   :  { %v498_v40 = vpop.eup %497  ;;  %v129_v42 = vmax.f32 %v97_v39, 1e-06  ;;  %513 = vpow2.f32 %v275_v31 }
 0x111   :  { %v500_v43 = vpop.eup %499  ;;  %v187_v46 = vmul.f32 0.6931472, %v498_v40  ;;  %v281_v50 = vmul.f32 1.442695, %v222_v38  ;;  %v329_v55 = vadd.f32 %v328_v47, %v327_v49 }
 0x112   :  { %515 = vlog2.f32 %v129_v42  ;;  %v502_v48 = vpop.eup %501  ;;  %v330_v53 = vsel %vm292_vm1, %v500_v43, 0.0 }
 0x113   :  { %517 = vpow2.f32 %v277_v37  ;;  %v223_v51 = vmul.f32 %v616_v3, %v187_v46  ;;  %v332_v58 = vsel %vm292_vm1, %v502_v48, 0.0  ;;  %v331_v60 = vadd.f32 %v330_v53, %v329_v55 }
 0x114   :  { %v504_v52 = vpop.eup %503  ;;  %519 = vpow2.f32 %v279_v45 }
 0x115   :  { %v506_v54 = vpop.eup %505  ;;  %v283_v56 = vmul.f32 1.442695, %v223_v51  ;;  %v189_v57 = vmul.f32 0.6931472, %v504_v52  ;;  %521 = vpow2.f32 %v281_v50  ;;  %v333_v1 = vadd.f32 %v332_v58, %v331_v60 }
 0x116   :  { %v508_v59 = vpop.eup %507  ;;  %v334_v63 = vsel %vm292_vm1, %v506_v54, 0.0  ;;  %v375_v50 = vstv %s397_s0 }
 0x117   :  { %v224_v61 = vmul.f32 %v616_v3, %v189_v57  ;;  %523 = vpow2.f32 %v283_v56  ;;  %v336_v5 = vsel %vm292_vm1, %v508_v59, 0.0  ;;  %v335_v7 = vadd.f32 %v334_v63, %v333_v1 }
 0x118   :  { %v510_v62 = vpop.eup %509 }
 0x119   :  { %v512_v0 = vpop.eup %511  ;;  %v285_v2 = vmul.f32 1.442695, %v224_v61  ;;  %v191_v4 = vmul.f32 0.6931472, %v510_v62  ;;  %v337_v12 = vadd.f32 %v336_v5, %v335_v7 }
 0x11a   :  { %v514_v6 = vpop.eup %513  ;;  %v338_v10 = vsel %vm292_vm1, %v512_v0, 0.0 }
 0x11b   :  { %525 = vpow2.f32 %v285_v2  ;;  %v225_v8 = vmul.f32 %v616_v3, %v191_v4  ;;  %v340_v15 = vsel %vm292_vm1, %v514_v6, 0.0  ;;  %v339_v17 = vadd.f32 %v338_v10, %v337_v12 }
 0x11c   :  { %v516_v9 = vpop.eup %515 }
 0x11d   :  { %v518_v11 = vpop.eup %517  ;;  %v287_v13 = vmul.f32 1.442695, %v225_v8  ;;  %v193_v14 = vmul.f32 0.6931472, %v516_v9  ;;  %v341_v21 = vadd.f32 %v340_v15, %v339_v17 }
 0x11e   :  { %v520_v16 = vpop.eup %519  ;;  %v342_v19 = vsel %vm292_vm1, %v518_v11, 0.0 }
 0x11f   :  { %527 = vpow2.f32 %v287_v13  ;;  %v226_v18 = vmul.f32 %v616_v3, %v193_v14  ;;  %v522_v20 = vpop.eup %521  ;;  %v344_v23 = vsel %vm292_vm1, %v520_v16, 0.0  ;;  %v343_v25 = vadd.f32 %v342_v19, %v341_v21 }
 0x120   :  { %v346_v26 = vsel %vm292_vm1, %v522_v20, 0.0 }
 0x121   :  { %v289_v22 = vmul.f32 1.442695, %v226_v18  ;;  %v524_v24 = vpop.eup %523  ;;  %v345_v28 = vadd.f32 %v344_v23, %v343_v25 }
 0x122   :  { %v348_v29 = vsel %vm292_vm1, %v524_v24, 0.0 }
 0x123   :  { %529 = vpow2.f32 %v289_v22  ;;  %v347_v30 = vadd.f32 %v346_v26, %v345_v28 }
 0x125   :  { %v526_v27 = vpop.eup %525  ;;  %v349_v32 = vadd.f32 %v348_v29, %v347_v30 }
 0x126   :  { %v350_v31 = vsel %vm292_vm1, %v526_v27, 0.0 }
 0x127   :  { %v351_v34 = vadd.f32 %v350_v31, %v349_v32 }
 0x129   :  { %v528_v3 = vpop.eup %527 }
 0x12a   :  { %v352_v33 = vsel %vm292_vm1, %v528_v3, 0.0 }
 0x12b   :  { %v353_v36 = vadd.f32 %v352_v33, %v351_v34 }
 0x12d   :  { %v530_v35 = vpop.eup %529 }
 0x12e   :  { %v354_v37 = vsel %vm292_vm1, %v530_v35, 0.0 }
 0x12f   :  { %v355_v38 = vadd.f32 %v354_v37, %v353_v36 }
 0x131   :  { %v356_v39 = vrot.slane %v355_v38, 4 }
 0x133   :  { %v357_v40 = vadd.f32 %v356_v39, %v355_v38 }
 0x135   :  { %v358_v41 = vrot.slane %v357_v40, 2 }
 0x137   :  { %v359_v42 = vadd.f32 %v358_v41, %v357_v40 }
 0x139   :  { %v360_v43 = vrot.slane %v359_v42, 1 }
 0x13b   :  { %v361_v45 = vadd.f32 %v360_v43, %v359_v42 }
 0x13d   :  { %v362_v46 = vadd.f32 %v361_v45, %v291_v44 }
 0x13f   :  { %364 = vst.msk [vmem:[#allocation6] sm:$0x1] %vm29_vm0, %v362_v46 }
 0x146   :  { %v371_v47 = vld [vmem:[#allocation6] sm:$0x1] }
 0x147   :  { %531 = vlog2.f32 %v371_v47 }
 0x151   :  { %v532_v48 = vpop.eup %531 }
 0x152   :  { %v373_v49 = vmul.f32 0.6931472, %v532_v48 }
 0x154   :  { %v395_v51 = vadd.f32 -5.5451775, %v373_v49 }
 0x156   :  { %v376_v52 = vmul.f32 %v395_v51, %v375_v50 }
 0x158   :  { %v377_v53 = vmul.f32 1.442695, %v376_v52 }
 0x15a   :  { %533 = vpow2.f32 %v377_v53 }
 0x164   :  { %v534_v54 = vpop.eup %533 }
 0x165   :  { %379 = vst.msk [vmem:[#allocation6] sm:$0x1] %vm29_vm0, %v534_v54 }
 0x166   :  { %568 = shalt.err (!%p565_p12)
}
 0x167   :  { %s569_s28 = scalar_lea.hbm %s712_s2, 16 }
 0x168   :  { %p570_p13 = scmp.ne.s32.totalorder %s712_s2, %s569_s28  ;;  %p573_p0 = scmp.lt.u32.totalorder %s569_s28, %s712_s2 }
 0x16a   :  { %p575_p1 = pnand %p573_p0, %p570_p13 }
 0x16c   :  { %578 = shalt.err (!%p575_p1)
}
 0x16d   :  { %389 = dma.vmem_to_hbm [thread:$0]  %s387_s23, 16, %s712_s2, [#allocation5]  }
 0x16e   :  { %581 = dma.done.wait [#allocation5], 16  }
 0x16f   :  { %582 = vsyncadd [#allocation5], 4294967280 }
 0x170   :  { %393 = vsyncpa [#allocation4], 1 }
 0x171   :  { %394 = vsyncpa [#allocation5], 1 }

</bundles_post_ra>
